<compile_context>
chip_gen: v7x
topology: tpu7x:2x2x1
jax: 0.10.0
libtpu: 0.0.40
codegen_flags: <defaults>
</compile_context>

<pallas_src>
import functools

import jax
import jax.numpy as jnp
from jax.experimental import pallas as pl
from jax.experimental.pallas import tpu as pltpu


def _min_posterior_sampling_kernel(xt_ref, w_ref, eps_ref, idx_ref,
                                   run_min, run_idx, *,
                                   sigma, n_total, n_tile, needs_mask):
    """One (b_tile, n_tile) step of the streaming argmin over candidates."""
    k = pl.program_id(1)

    @pl.when(k == 0)
    def _():
        run_min[...] = jnp.full_like(run_min, jnp.inf)
        run_idx[...] = jnp.zeros_like(run_idx)

    xt = xt_ref[...]            # (Bt, d, Nt)  f32, N lane-dense
    w = w_ref[...]              # (1, d)       f32
    eps = eps_ref[...]          # (Bt, S, Nt)  f32

    # Posterior mean = X @ w, done on the VPU: broadcast-multiply + sum over d.
    mean = jnp.sum(xt * w[:, :, None], axis=1, keepdims=True)      # (Bt, 1, Nt)

    # rsample: mean + sigma * eps  (IdentityMCObjective).
    samples = mean + jnp.float32(sigma) * eps                       # (Bt, S, Nt)

    # Global candidate index of each lane in this chunk.
    lane_ids = jax.lax.broadcasted_iota(jnp.int32, (1, 1, n_tile), 2)
    global_ids = lane_ids + k * n_tile                              # (1, 1, Nt)

    if needs_mask:
        # Padded lanes (from N -> N_pad) can never win the argmin.
        samples = jnp.where(global_ids < n_total, samples, jnp.inf)

    # Chunk-local min + first-occurrence argmin along the lane (N) axis.
    chunk_min = jnp.min(samples, axis=2, keepdims=True)             # (Bt, S, 1)
    masked = jnp.where(samples == chunk_min, global_ids, n_total)
    chunk_idx = jnp.min(masked, axis=2, keepdims=True)              # (Bt, S, 1)

    # Fold into the running accumulator; strict "<" preserves the earliest
    # index on ties across chunks (torch.argmin first-occurrence semantics).
    # TODO(synk): NaN samples follow jnp.min (idx stays at the init value)
    # rather than torch.argmin's NaN-position behavior.
    better = chunk_min < run_min[...]
    run_idx[...] = jnp.where(better, chunk_idx, run_idx[...])
    run_min[...] = jnp.where(better, chunk_min, run_min[...])

    @pl.when(k == pl.num_programs(1) - 1)
    def _():
        idx_ref[...] = run_idx[...]


def min_posterior_sampling(X, w, eps, sigma, *, b_tile=1, n_tile=None):
    """X: (B, N, d), w: (d, 1), eps: (B, S, N).  Returns ((B,S,d), (B,S))."""
    B, N, d = X.shape
    S = eps.shape[1]
    assert eps.shape == (B, S, N)
    assert B % b_tile == 0

    if n_tile is None:
        # Lane-dense chunk: at least 128 lanes, up to 512 to amortize grid
        # step overhead without blowing VMEM for the (Bt, S, Nt) sample tile.
        n_tile = min(512, pl.cdiv(N, 128) * 128)
    n_pad = pl.cdiv(N, n_tile) * n_tile
    needs_mask = n_pad != N

    # Lane-dense working layouts (layout plumbing only).
    Xt = jnp.transpose(X, (0, 2, 1)).astype(jnp.float32)       # (B, d, N)
    w_row = w.reshape(1, d).astype(jnp.float32)                # (1, d)
    eps_f32 = eps.astype(jnp.float32)
    if needs_mask:
        Xt = jnp.pad(Xt, ((0, 0), (0, 0), (0, n_pad - N)))
        eps_f32 = jnp.pad(eps_f32, ((0, 0), (0, 0), (0, n_pad - N)))

    grid = (B // b_tile, n_pad // n_tile)

    grid_spec = pltpu.PrefetchScalarGridSpec(
        num_scalar_prefetch=0,
        grid=grid,
        in_specs=[
            pl.BlockSpec((b_tile, d, n_tile), lambda b, k: (b, 0, k)),
            pl.BlockSpec((1, d), lambda b, k: (0, 0)),
            pl.BlockSpec((b_tile, S, n_tile), lambda b, k: (b, 0, k)),
        ],
        out_specs=pl.BlockSpec((b_tile, S, 1), lambda b, k: (b, 0, 0)),
        scratch_shapes=[
            pltpu.VMEM((b_tile, S, 1), jnp.float32),   # running min value
            pltpu.VMEM((b_tile, S, 1), jnp.int32),     # running argmin index
        ],
    )

    idx3 = pl.pallas_call(
        functools.partial(_min_posterior_sampling_kernel,
                          sigma=sigma, n_total=N, n_tile=n_tile,
                          needs_mask=needs_mask),
        grid_spec=grid_spec,
        out_shape=jax.ShapeDtypeStruct((B, S, 1), jnp.int32),
        compiler_params=pltpu.CompilerParams(
            dimension_semantics=("parallel", "arbitrary"),
            vmem_limit_bytes=64 * 1024 * 1024),
    )(Xt, w_row, eps_f32)

    idx = idx3[..., 0]                                            # (B, S)
    # torch.gather(Xe, -2, idcs): O(B*S*d) gather of the winning rows.
    sampled_X = jnp.take_along_axis(X, idx[..., None], axis=1)    # (B, S, d)
    return sampled_X, idx


def reference(X, w, eps, sigma):
    # Pure-JAX mirror of the PyTorch forward (GP branch, replacement=True).
    mean = jnp.einsum("bnd,dk->bnk", X, w)[..., 0]                # (B, N)
    samples = mean[:, None, :] + sigma * eps                      # (B, S, N)
    idx = jnp.argmin(samples, axis=-1)                            # (B, S)
    sampled = jnp.take_along_axis(X, idx[..., None], axis=1)      # (B, S, d)
    return sampled, idx


if __name__ == "__main__":
    B, N, d, S = 2, 256, 8, 4     # batch, candidates, feature dim, num_samples
    sigma = 0.1

    key = jax.random.PRNGKey(0)
    kx, kw, ke = jax.random.split(key, 3)
    X = jax.random.uniform(kx, (B, N, d), dtype=jnp.float32)
    w = jax.random.normal(kw, (d, 1), dtype=jnp.float32)          # synthetic model weights
    eps = jax.random.normal(ke, (B, S, N), dtype=jnp.float32)     # rsample noise, eps[b,s,n]==eps_torch[s,b,n]
    # TODO(synk): a real fitted GP posterior (data-dependent mean/covariance,
    # Cholesky-correlated rsample) is model-state; replaced by the synthetic
    # linear-Gaussian posterior above.

    sampled_X, idx = min_posterior_sampling(X, w, eps, sigma, b_tile=1)
    jax.block_until_ready((sampled_X, idx))

    ref_X, ref_idx = reference(X, w, eps, sigma)
    assert sampled_X.shape == (B, S, d) and idx.shape == (B, S)
    assert jnp.array_equal(idx, ref_idx.astype(jnp.int32))
    assert jnp.allclose(sampled_X, ref_X, atol=1e-6)

    print("KERNEL_OK")
</pallas_src>

<mosaic_0001>
module attributes {stable_mosaic.version = 11 : i64} {
  func.func @_min_posterior_sampling_kernel(%arg0: i32, %arg1: i32, %arg2: memref<1x8x256xf32, #tpu.memory_space<vmem>>, %arg3: memref<1x8xf32, #tpu.memory_space<vmem>>, %arg4: memref<1x4x256xf32, #tpu.memory_space<vmem>>, %arg5: memref<1x4x1xi32, #tpu.memory_space<vmem>>, %arg6: memref<1x4x1xf32, #tpu.memory_space<vmem>>, %arg7: memref<1x4x1xi32, #tpu.memory_space<vmem>>) attributes {dimension_semantics = [#tpu.dimension_semantics<parallel>, #tpu.dimension_semantics<arbitrary>], iteration_bounds = array<i64: 2, 1>, scalar_prefetch = 0 : i64, scratch_operands = 2 : i64, tpu.core_type = #tpu.core_type<tc>, window_params = [{transform_indices = @transform_0, window_bounds = array<i64: 1, 8, 256>}, {pipeline_mode = #tpu.pipeline_mode<synchronous>, transform_indices = @transform_1, window_bounds = array<i64: 1, 8>}, {transform_indices = @transform_2, window_bounds = array<i64: 1, 4, 256>}, {transform_indices = @transform_3, window_bounds = array<i64: 1, 4, 1>}]} {
    %c0_i32 = arith.constant 0 : i32
    %0 = arith.cmpi eq, %arg1, %c0_i32 : i32
    %1 = arith.extui %0 : i1 to i32
    %c0_i32_0 = arith.constant 0 : i32
    %2 = arith.cmpi ne, %1, %c0_i32_0 : i32
    scf.if %2 {
      %cst_29 = arith.constant 0x7F800000 : f32
      %40 = vector.broadcast %cst_29 : f32 to vector<1x4x1xf32>
      %c0_30 = arith.constant 0 : index
      %c0_31 = arith.constant 0 : index
      %c0_32 = arith.constant 0 : index
      %41 = vector.load %arg6[%c0_30, %c0_31, %c0_32] : memref<1x4x1xf32, #tpu.memory_space<vmem>>, vector<1x4x1xf32>
      tpu.vector_store %arg6[%c0_30, %c0_31, %c0_32], %40 {strides = array<i32>} : memref<1x4x1xf32, #tpu.memory_space<vmem>>, vector<1x4x1xf32>,
      %c0_i32_33 = arith.constant 0 : i32
      %42 = vector.broadcast %c0_i32_33 : i32 to vector<1x4x1xi32>
      %c0_34 = arith.constant 0 : index
      %c0_35 = arith.constant 0 : index
      %c0_36 = arith.constant 0 : index
      %43 = vector.load %arg7[%c0_34, %c0_35, %c0_36] : memref<1x4x1xi32, #tpu.memory_space<vmem>>, vector<1x4x1xi32>
      tpu.vector_store %arg7[%c0_34, %c0_35, %c0_36], %42 {strides = array<i32>} : memref<1x4x1xi32, #tpu.memory_space<vmem>>, vector<1x4x1xi32>,
    } else {
    }
    %c0 = arith.constant 0 : index
    %c0_1 = arith.constant 0 : index
    %c0_2 = arith.constant 0 : index
    %3 = vector.load %arg2[%c0, %c0_1, %c0_2] : memref<1x8x256xf32, #tpu.memory_space<vmem>>, vector<1x8x256xf32>
    %c0_3 = arith.constant 0 : index
    %c0_4 = arith.constant 0 : index
    %4 = vector.load %arg3[%c0_3, %c0_4] : memref<1x8xf32, #tpu.memory_space<vmem>>, vector<1x8xf32>
    %c0_5 = arith.constant 0 : index
    %c0_6 = arith.constant 0 : index
    %c0_7 = arith.constant 0 : index
    %5 = vector.load %arg4[%c0_5, %c0_6, %c0_7] : memref<1x4x256xf32, #tpu.memory_space<vmem>>, vector<1x4x256xf32>
    %6 = vector.shape_cast %4 : vector<1x8xf32> to vector<1x8x1xf32>
    %7 = vector.broadcast %6 : vector<1x8x1xf32> to vector<1x8x256xf32>
    %8 = arith.mulf %3, %7 : vector<1x8x256xf32>
    %cst = arith.constant dense<0.000000e+00> : vector<1x256xf32>
    %9 = vector.multi_reduction <add>, %8, %cst [1] : vector<1x8x256xf32> to vector<1x256xf32>
    %10 = vector.shape_cast %9 : vector<1x256xf32> to vector<1x1x256xf32>
    %cst_8 = arith.constant 1.000000e-01 : f32
    %11 = vector.broadcast %cst_8 : f32 to vector<1x4x256xf32>
    %12 = arith.mulf %11, %5 : vector<1x4x256xf32>
    %13 = vector.broadcast %10 : vector<1x1x256xf32> to vector<1x4x256xf32>
    %14 = arith.addf %13, %12 : vector<1x4x256xf32>
    %15 = tpu.iota {dimensions = array<i32: 2>} : vector<1x1x256xi32>
    %c256_i32 = arith.constant 256 : i32
    %16 = arith.muli %arg1, %c256_i32 : i32
    %17 = vector.broadcast %16 : i32 to vector<1x1x256xi32>
    %18 = arith.addi %15, %17 : vector<1x1x256xi32>
    %cst_9 = arith.constant dense<0x7F800000> : vector<1x4xf32>
    %19 = vector.multi_reduction <minimumf>, %14, %cst_9 [2] : vector<1x4x256xf32> to vector<1x4xf32>
    %20 = vector.shape_cast %19 : vector<1x4xf32> to vector<1x4x1xf32>
    %21 = vector.broadcast %20 : vector<1x4x1xf32> to vector<1x4x256xf32>
    %22 = arith.cmpf oeq, %14, %21 : vector<1x4x256xf32>
    %c256_i32_10 = arith.constant 256 : i32
    %23 = vector.shape_cast %18 : vector<1x1x256xi32> to vector<1x1x256xi32>
    %24 = vector.broadcast %23 : vector<1x1x256xi32> to vector<1x4x256xi32>
    %25 = vector.broadcast %c256_i32_10 : i32 to vector<1x4x256xi32>
    %26 = arith.select %22, %24, %25 : vector<1x4x256xi1>, vector<1x4x256xi32>
    %cst_11 = arith.constant dense<2147483647> : vector<1x4xi32>
    %27 = vector.multi_reduction <minsi>, %26, %cst_11 [2] : vector<1x4x256xi32> to vector<1x4xi32>
    %28 = vector.shape_cast %27 : vector<1x4xi32> to vector<1x4x1xi32>
    %c0_12 = arith.constant 0 : index
    %c0_13 = arith.constant 0 : index
    %c0_14 = arith.constant 0 : index
    %29 = vector.load %arg6[%c0_12, %c0_13, %c0_14] : memref<1x4x1xf32, #tpu.memory_space<vmem>>, vector<1x4x1xf32>
    %30 = arith.cmpf olt, %20, %29 : vector<1x4x1xf32>
    %c0_15 = arith.constant 0 : index
    %c0_16 = arith.constant 0 : index
    %c0_17 = arith.constant 0 : index
    %31 = vector.load %arg7[%c0_15, %c0_16, %c0_17] : memref<1x4x1xi32, #tpu.memory_space<vmem>>, vector<1x4x1xi32>
    %32 = arith.select %30, %28, %31 : vector<1x4x1xi1>, vector<1x4x1xi32>
    %c0_18 = arith.constant 0 : index
    %c0_19 = arith.constant 0 : index
    %c0_20 = arith.constant 0 : index
    %33 = vector.load %arg7[%c0_18, %c0_19, %c0_20] : memref<1x4x1xi32, #tpu.memory_space<vmem>>, vector<1x4x1xi32>
    tpu.vector_store %arg7[%c0_18, %c0_19, %c0_20], %32 {strides = array<i32>} : memref<1x4x1xi32, #tpu.memory_space<vmem>>, vector<1x4x1xi32>,
    %c0_21 = arith.constant 0 : index
    %c0_22 = arith.constant 0 : index
    %c0_23 = arith.constant 0 : index
    %34 = vector.load %arg6[%c0_21, %c0_22, %c0_23] : memref<1x4x1xf32, #tpu.memory_space<vmem>>, vector<1x4x1xf32>
    %35 = arith.select %30, %20, %34 : vector<1x4x1xi1>, vector<1x4x1xf32>
    %c0_24 = arith.constant 0 : index
    %c0_25 = arith.constant 0 : index
    %c0_26 = arith.constant 0 : index
    %36 = vector.load %arg6[%c0_24, %c0_25, %c0_26] : memref<1x4x1xf32, #tpu.memory_space<vmem>>, vector<1x4x1xf32>
    tpu.vector_store %arg6[%c0_24, %c0_25, %c0_26], %35 {strides = array<i32>} : memref<1x4x1xf32, #tpu.memory_space<vmem>>, vector<1x4x1xf32>,
    %c0_i32_27 = arith.constant 0 : i32
    %37 = arith.cmpi eq, %arg1, %c0_i32_27 : i32
    %38 = arith.extui %37 : i1 to i32
    %c0_i32_28 = arith.constant 0 : i32
    %39 = arith.cmpi ne, %38, %c0_i32_28 : i32
    scf.if %39 {
      %c0_29 = arith.constant 0 : index
      %c0_30 = arith.constant 0 : index
      %c0_31 = arith.constant 0 : index
      %40 = vector.load %arg7[%c0_29, %c0_30, %c0_31] : memref<1x4x1xi32, #tpu.memory_space<vmem>>, vector<1x4x1xi32>
      %c0_32 = arith.constant 0 : index
      %c0_33 = arith.constant 0 : index
      %c0_34 = arith.constant 0 : index
      %41 = vector.load %arg5[%c0_32, %c0_33, %c0_34] : memref<1x4x1xi32, #tpu.memory_space<vmem>>, vector<1x4x1xi32>
      tpu.vector_store %arg5[%c0_32, %c0_33, %c0_34], %40 {strides = array<i32>} : memref<1x4x1xi32, #tpu.memory_space<vmem>>, vector<1x4x1xi32>,
    } else {
    }
    return
  }
  func.func @transform_0(%arg0: i32, %arg1: i32) -> (i32, i32, i32) {
    %c0_i32 = arith.constant 0 : i32
    %c0_i32_0 = arith.constant 0 : i32
    return %arg0, %c0_i32, %arg1 : i32, i32, i32
  }
  func.func @transform_1(%arg0: i32, %arg1: i32) -> (i32, i32) {
    %c0_i32 = arith.constant 0 : i32
    %c0_i32_0 = arith.constant 0 : i32
    %c0_i32_1 = arith.constant 0 : i32
    return %c0_i32, %c0_i32_0 : i32, i32
  }
  func.func @transform_2(%arg0: i32, %arg1: i32) -> (i32, i32, i32) {
    %c0_i32 = arith.constant 0 : i32
    %c0_i32_0 = arith.constant 0 : i32
    return %arg0, %c0_i32, %arg1 : i32, i32, i32
  }
  func.func @transform_3(%arg0: i32, %arg1: i32) -> (i32, i32, i32) {
    %c0_i32 = arith.constant 0 : i32
    %c0_i32_0 = arith.constant 0 : i32
    %c0_i32_1 = arith.constant 0 : i32
    return %arg0, %c0_i32, %c0_i32_0 : i32, i32, i32
  }
}

</mosaic_0001>

<bundles_post_ra>
// kernel: tpu_custom_call.1
= control target key start
LH: loop header
LB: loop body
LE: loop exit
PB: predicated region body
PF: predicated region fallthrough
CT: control target
= control target key end

     0   :  { %s1047_s0 = inlined_call_operand.hbm [shape: f32[2,8,256], index: 0, kind: input, shape index: {}]   ;;  %s1048_s1 = inlined_call_operand.hbm [shape: f32[1,8], index: 1, kind: input, shape index: {}]   ;;  %s1049_s2 = inlined_call_operand.hbm [shape: f32[2,4,256], index: 2, kind: input, shape index: {}]   ;;  %s1050_s3 = inlined_call_operand.hbm [shape: s32[2,4,1], index: 3, kind: output, shape index: {}]  }
   0x1   :  { %1056 = sst [smem:[#allocation15_spill]] %s1047_s0 }
   0x2   :  { %8 = vsyncpa [#allocation5], 0 }
   0x3   :  { %10 = vsyncpa [#allocation5 + $0x1], 0 }
   0x4   :  { %11 = vsyncpa [#allocation8], 0 }
   0x5   :  { %12 = vsyncpa [#allocation6], 0 }
   0x6   :  { %14 = vsyncpa [#allocation6 + $0x1], 0  ;;  %s781_s12 = smov 0   ;;  %s783_s13 = smov 0  }
   0x7   :  { %s785_s14 = smov 0   ;;  %s787_s15 = smov 0  }
   0x8   :  { %s789_s16 = smov 0   ;;  %s791_s17 = smov 0  }
   0x9 LB: > { %s32_s18 = sadd.s32 1, %s749_s16  ;;  %s41_s19 = sadd.s32 1, %s741_s14  ;;  %s753_s17 = sphi %s791_s17, %s20_s17   ;;  %s749_s16 = sphi %s789_s16, %s1076_s16   ;;  %s745_s15 = sphi %s787_s15, %s1075_s15   ;;  %s741_s14 = sphi %s785_s14, %s1074_s14   ;;  %s737_s13 = sphi %s783_s13, %s1073_s13   ;;  %s733_s12 = sphi %s781_s12, %s1072_s12  }
   0xa   : > { %p34_p0 = scmp.ge.s32.totalorder %s32_s18, 2  ;;  %p48_p1 = scmp.ne.s32.totalorder %s741_s14, %s737_s13 }
   0xb   : > { %p49_p2 = scmp.eq.s32.totalorder %s753_s17, 0  ;;  %p521_p5 = scmp.lt.s32.totalorder %s753_s17, 2 }
   0xc   : > { %s1078_s18 = smov (%p34_p0, %s32_s18), 0  ;;  %s164_s21 = sand.u32 1, %s753_s17  }
   0xd   : > { %p50_p4 = por %p49_p2, %p48_p1  ;;  %s36_s20 = ssub.s32 %s749_s16, %s1078_s18 }
   0xe   : > { %p39_p6 = scmp.eq.s32.totalorder %s36_s20, 0  ;;  %s166_s22 = sand.u32 1, %s741_s14  }
   0xf   : > { %s493_s23 = sshll.u32 %s749_s16, 8  ;;  %s477_s25 = sshll.u32 %s166_s22, 4 }
  0x10   : > { %s829_s24 = scalar_select %p39_p6, %s741_s14, %s41_s19  }
  0x11   : > { %s1057_s0 = sld [smem:[#allocation15_spill]]  ;;  %p836_p7 = pnand %p521_p5, %p50_p4 }
  0x12   : > { %s168_s30 = scalar_lea.vmem [#allocation4], %s477_s25  ;;  %s840_s5 = sshll.u32 %s166_s22, 3 }
  0x13   : > { %s178_s4 = sshll.u32 %s168_s30, 4  ;;  %s844_s6 = scalar_lea.sflag [#allocation5], %s164_s21  ;;  %s842_s4 = int_to_ptr.vmem [resolvable:$true] %s178_s4 }
  0x14   : > { %p577_p9 = pneg %p836_p7 }
  0x17   : > { %s834_s28 = scalar_lea.hbm %s1057_s0, %s493_s23  ;;  %s580_s10 = scalar_lea.hbm %s1057_s0, 512 }
  0x18   : > { %s575_s7 = scalar_lea.hbm %s834_s28, 256  ;;  %p581_p12 = scmp.lt.u32.totalorder %s834_s28, %s1057_s0 }
  0x19   : > { %p576_p8 = scmp.ne.s32.totalorder %s834_s28, %s575_s7  ;;  %p582_p13 = scmp.lt.u32.totalorder %s580_s10, %s575_s7 }
  0x1a   : > { %p584_p2 = scmp.lt.u32.totalorder %s575_s7, %s834_s28 }
  0x1b   : > { %p578_p10 = pnand %p577_p9, %p576_p8  ;;  %p583_p0 = por %p582_p13, %p581_p12 }
  0x1d   : > { %p579_p11 = pneg %p578_p10  ;;  %p585_p4 = por %p584_p2, %p583_p0 }
  0x1f   : > { %p586_p5 = pnand %p585_p4, %p579_p11 }
  0x21   : > { %589 = shalt.err (!%p586_p5)
}
  0x22   : > { %s590_s20 = scalar_lea.vmem %s842_s4, 256  ;;  %s755_s21 = smov [#allocation4]  }
  0x23   : > { %p591_p6 = scmp.ne.s32.totalorder %s842_s4, %s590_s20  ;;  %s595_s22 = sshll.u32 %s755_s21, 4  ;;  %s596_s22 = int_to_ptr.vmem [resolvable:$false] %s595_s22 }
  0x24   : > { %s597_s23 = scalar_lea.vmem %s596_s22, 512  ;;  %p598_p3 = scmp.lt.s32.totalorder %s842_s4, %s596_s22 }
  0x25   : > { %p593_p8 = pnand %p591_p6, %p577_p9  ;;  %p599_p12 = scmp.lt.s32.totalorder %s597_s23, %s590_s20 }
  0x27   : > { %p594_p10 = pneg %p593_p8  ;;  %p600_p13 = por %p599_p12, %p598_p3 }
  0x29   : > { %p601_p0 = pnand %p600_p13, %p594_p10 }
  0x2b   : > { %604 = shalt.err (!%p601_p0)
}
  0x2c   : > { %512 = dma.hbm_to_vmem [thread:$0]  (!%p836_p7), %s834_s28, 256, %s842_s4, %s844_s6  }
  0x2d   : > { %s873_s25 = sadd.s32 4294967295, %s753_s17   ;;  %s473_s26 = sadd.s32 4294967294, %s753_s17  }
  0x2e   : > { %p54_p3 = scmp.ne.s32.totalorder %s737_s13, %s733_s12  ;;  %p1051_p11 = scmp.eq.s32.totalorder %s873_s25, 0 }
  0x2f   : > { %p127_p2 = scmp.eq.s32.totalorder %s873_s25, 1  ;;  %p133_p4 = scmp.eq.s32.totalorder %s473_s26, 1 }
  0x30   : > { %p882_p5 = por %p1051_p11, %p54_p3  ;;  %p474_p6 = scmp.ge.s32.totalorder %s753_s17, 1 }
  0x31   : > { %p890_p8 = por %p127_p2, %p48_p1  ;;  %p894_p10 = por %p133_p4, %p54_p3 }
  0x32   : > { %s1059_s27 = scalar_select %p882_p5, 1, 0 }
  0x33   : > { %s1060_s28 = scalar_select %p890_p8, 1, 0 }
  0x34   : > { %s1061_s30 = scalar_select %p894_p10, 1, 0 }
  0x35   : > { %p140_p12 = scmp.lt.s32.totalorder %s753_s17, 3  ;;  %s756_s7 = smov [#allocation7]  }
  0x36   : > { %s153_s8 = sshll.u32 %s756_s7, 4  ;;  %s494_s9 = sshll.u32 %s749_s16, 7  ;;  %s911_s8 = int_to_ptr.vmem [resolvable:$true] %s153_s8 }
  0x37   : > { %p899_p13 = pnand %p474_p6, %p140_p12  ;;  %s909_s19 = scalar_lea.hbm %s1049_s2, %s494_s9 }
  0x38   : > { %s189_s20 = scalar_lea.vmem [#allocation9], %s840_s5  ;;  %s605_s23 = scalar_lea.hbm %s909_s19, 128 }
  0x39   : > { %s1062_s4 = scalar_select %p899_p13, 1, 0 }
  0x3a   : > { %p505_p0 = pneg %p899_p13  ;;  %s199_s21 = sshll.u32 %s189_s20, 4  ;;  %s200_s21 = int_to_ptr.vmem [resolvable:$true] %s199_s21 }
  0x3b   : > { %p606_p3 = scmp.ne.s32.totalorder %s909_s19, %s605_s23  ;;  %s610_s9 = scalar_lea.hbm %s1049_s2, 256 }
  0x3c   : > { %p916_p1 = pnand %p505_p0, %p1051_p11  ;;  %p611_p6 = scmp.lt.u32.totalorder %s909_s19, %s1049_s2 }
  0x3d   : > { %p608_p2 = pnand %p606_p3, %p577_p9  ;;  %p612_p12 = scmp.lt.u32.totalorder %s610_s9, %s605_s23 }
  0x3e   : > { %s1063_s22 = scalar_select %p916_p1, 1, 0 }
  0x3f   : > { %p609_p4 = pneg %p608_p2  ;;  %p613_p0 = por %p612_p12, %p611_p6 }
  0x40   : > { %p614_p11 = scmp.lt.u32.totalorder %s605_s23, %s909_s19 }
  0x42   : > { %p615_p10 = por %p614_p11, %p613_p0 }
  0x44   : > { %p616_p8 = pnand %p615_p10, %p609_p4 }
  0x46   : > { %619 = shalt.err (!%p616_p8)
}
  0x47   : > { %s620_s5 = scalar_lea.vmem %s200_s21, 128  ;;  %s757_s20 = smov [#allocation9]  }
  0x48   : > { %p621_p5 = scmp.ne.s32.totalorder %s200_s21, %s620_s5  ;;  %s625_s26 = sshll.u32 %s757_s20, 4  ;;  %s626_s26 = int_to_ptr.vmem [resolvable:$false] %s625_s26 }
  0x49   : > { %s627_s7 = scalar_lea.vmem %s626_s26, 256  ;;  %p628_p13 = scmp.lt.s32.totalorder %s200_s21, %s626_s26 }
  0x4a   : > { %p623_p3 = pnand %p621_p5, %p577_p9  ;;  %p629_p1 = scmp.lt.s32.totalorder %s627_s7, %s620_s5 }
  0x4c   : > { %p624_p2 = pneg %p623_p3  ;;  %p630_p6 = por %p629_p1, %p628_p13 }
  0x4e   : > { %p631_p12 = pnand %p630_p6, %p624_p2 }
  0x50   : > { %634 = shalt.err (!%p631_p12)
}
  0x51   : > { %515 = dma.hbm_to_vmem [thread:$0]  (!%p836_p7), %s909_s19, 128, %s200_s21, %s844_s6  }
  0x52   : > { %s635_s10 = scalar_lea.hbm %s1048_s1, 16  ;;  %p1064_p11 = scmp.ne.s32.totalorder %s1063_s22, 0 }
  0x53   : > { %p636_p9 = scmp.ne.s32.totalorder %s1048_s1, %s635_s10  ;;  %p642_p13 = scmp.lt.u32.totalorder %s635_s10, %s1048_s1 }
  0x54   : > { %p637_p5 = pneg %p1064_p11 }
  0x56   : > { %p638_p8 = pnand %p637_p5, %p636_p9 }
  0x58   : > { %p639_p10 = pneg %p638_p8 }
  0x5a   : > { %p644_p1 = pnand %p642_p13, %p639_p10 }
  0x5c   : > { %647 = shalt.err (!%p644_p1)
}
  0x5d   : > { %s648_s29 = scalar_lea.vmem %s911_s8, 16  ;;  %s655_s0 = scalar_lea.vmem %s911_s8, 32 }
  0x5e   : > { %p649_p7 = scmp.ne.s32.totalorder %s911_s8, %s648_s29  ;;  %p656_p3 = scmp.lt.s32.totalorder %s911_s8, %s911_s8 }
  0x5f   : > { %p657_p2 = scmp.lt.s32.totalorder %s655_s0, %s648_s29 }
  0x60   : > { %p651_p4 = pnand %p649_p7, %p637_p5 }
  0x61   : > { %p658_p6 = por %p657_p2, %p656_p3 }
  0x62   : > { %p652_p0 = pneg %p651_p4 }
  0x64   : > { %p659_p12 = pnand %p658_p6, %p652_p0 }
  0x66   : > { %662 = shalt.err (!%p659_p12)
}
  0x67   : > { %508 = dma.hbm_to_vmem [thread:$0]  (!%p1064_p11), %s1048_s1, 16, %s911_s8, [#allocation8]  }
  0x68   : > { %p1065_p9 = scmp.ne.s32.totalorder %s1062_s4, 0 }
  0x69   : > { %s210_s21 = sand.u32 (!%p1065_p9), 1, %s873_s25   ;;  %s966_s26 = sand.u32 (!%p1065_p9), 1, %s737_s13  }
  0x6a   : > { %208 = sbr.rel (%p1065_p9) target bundleno = 719 (0x2cf), region = 32  ;;  %s484_s7 = sshll.u32 (!%p1065_p9), %s966_s26, 4 }
  0x6b   : > { %s211_s23 = scalar_lea.sflag (!%p1065_p9), [#allocation5], %s210_s21  ;;  %s214_s9 = scalar_lea.vmem (!%p1065_p9), [#allocation4], %s484_s7 }
  0x6c   : > { %p1066_p5 = scmp.ne.s32.totalorder (!%p1065_p9), %s1059_s27, 0 }
  0x71   : > { %716 = dma.done.wait (%p1066_p5), %s211_s23, 256  }
  0x72   : > { %718 = vsyncadd (%p1066_p5), %s211_s23, 4294967040  ;;  %p1067_p11 = scmp.eq.s32.totalorder %s873_s25, 0 }
  0x74   : > { %720 = dma.done.wait (%p1067_p11), [#allocation8], 16   ;;  %p1068_p8 = pmov %p1067_p11 }
  0x75   : > { %s486_s4 = sshll.u32 %s966_s26, 3 }
  0x76   : > { %722 = vsyncadd (%p1068_p8), [#allocation8], 4294967280  ;;  %s227_s8 = scalar_lea.vmem [#allocation9], %s486_s4 }
  0x77   : > { %724 = dma.done.wait (%p1066_p5), %s211_s23, 128  }
  0x78   : > { %726 = vsyncadd (%p1066_p5), %s211_s23, 4294967168  ;;  %v488_v0 = vld [vmem:[#allocation7] ss:$0 sm:$0xff]  ;;  %vm261_vm0 = vcmask 3072   ;;  %v758_v1 = vmov inf   ;;  %v265_v3 = vld [vmem:[%s214_s9 + $0x8] sm:$0xff]  ;;  %v295_v27 = vlaneseq }
  0x79   : > { %273 = vbcast.lane.b32.xlu0 %v488_v0, 256  ;;  %262 = vst.msk [vmem:[#allocation2] sm:$0xf] %vm261_vm0, %v758_v1  ;;  %v264_v2 = vld [vmem:[%s214_s9] sm:$0xff]  ;;  %vm302_vm1 = vcmask 1043456   ;;  %v759_v41 = vmov 0  }
  0x7a   : > { %v267_v9 = vld [vmem:[%s227_s8] sm:$0xff]  ;;  %v296_v28 = vand.u32 127, %v295_v27  ;;  %263 = vst.msk [vmem:[#allocation3] sm:$0xf] %vm261_vm0, %v759_v41  ;;  %s487_s25 = sshll.u32 %s966_s26, 2  ;;  %s490_s27 = sshll.u32 %s745_s15, 6 }
  0x7b   : > { %v289_v14 = vmul.f32 0.1, %v267_v9  ;;  %s254_s22 = scalar_lea.vmem [#allocation10], %s487_s25  ;;  %s997_s20 = scalar_lea.hbm %s1050_s3, %s490_s27 }
  0x7c   : > { %v297_v29 = vadd.s32 128, %v296_v28  ;;  %s358_s10 = sshll.u32 %s254_s22, 4  ;;  %s345_s29 = scalar_lea.sflag [#allocation6], %s966_s26  ;;  %s999_s10 = int_to_ptr.vmem [resolvable:$true] %s358_s10 }
  0x7d   : > { %v291_v19 = vcombine.high %v289_v14, %v289_v14  ;;  %s663_s0 = scalar_lea.vmem %s999_s10, 64  ;;  %p1069_p13 = scmp.ne.s32.totalorder %s1060_s28, 0 }
  0x7e   : > { %p664_p10 = scmp.ne.s32.totalorder %s999_s10, %s663_s0  ;;  %s760_s15 = smov [#allocation10]  }
  0x7f   : > { %s667_s6 = sshll.u32 %s760_s15, 4  ;;  %s668_s6 = int_to_ptr.vmem [resolvable:$false] %s667_s6 }
  0x80   : > { %v330_v30 = vld [vmem:[#allocation2] sm:$0xf]  ;;  %p665_p1 = pnand %p664_p10, %p1069_p13  ;;  %s669_s19 = scalar_lea.vmem %s668_s6, 128 }
  0x81   : > { %v336_v31 = vld [vmem:[#allocation2] sm:$0xf]  ;;  %v332_v50 = vld [vmem:[#allocation3] sm:$0xf]  ;;  %p670_p4 = scmp.lt.s32.totalorder %s999_s10, %s668_s6  ;;  %p671_p0 = scmp.lt.s32.totalorder %s669_s19, %s663_s0 }
  0x82   : > { %p666_p7 = pneg %p665_p1 }
  0x83   : > { %p672_p3 = por %p671_p0, %p670_p4 }
  0x85   : > { %p673_p2 = pnand %p672_p3, %p666_p7 }
  0xeb   : > { %v274_v4 = vpop.permute.xlu0 %273 }
  0xec   : > { %v275_v5 = vmul.f32 %v274_v4, %v264_v2  ;;  %v276_v6 = vmul.f32 %v274_v4, %v265_v3 }
  0xee   : > { %v277_v7 = vrot.slane %v275_v5, 4  ;;  %v283_v8 = vrot.slane %v276_v6, 4 }
  0xf0   : > { %v278_v10 = vadd.f32 %v277_v7, %v275_v5  ;;  %v284_v11 = vadd.f32 %v283_v8, %v276_v6 }
  0xf2   : > { %v279_v12 = vrot.slane %v278_v10, 2  ;;  %v285_v13 = vrot.slane %v284_v11, 2 }
  0xf4   : > { %v280_v15 = vadd.f32 %v279_v12, %v278_v10  ;;  %v286_v16 = vadd.f32 %v285_v13, %v284_v11 }
  0xf6   : > { %v281_v17 = vrot.slane %v280_v15, 1  ;;  %v287_v18 = vrot.slane %v286_v16, 1 }
  0xf8   : > { %v282_v20 = vadd.f32 %v281_v17, %v280_v15  ;;  %v288_v21 = vadd.f32 %v287_v18, %v286_v16 }
  0xfa   : > { %v293_v22 = vadd.f32 %v289_v14, %v282_v20  ;;  %v294_v23 = vadd.f32 %v291_v19, %v288_v21 }
  0xfc   : > { %v303_v24 = vsel %vm302_vm1, %v293_v22, inf  ;;  %v304_v25 = vsel %vm302_vm1, %v294_v23, inf }
  0xfd   : > { %v305_v26 = vmin.f32 %v303_v24, %v304_v25 }
  0xff   : > { %306 = vmin.xlane.f32.xlu0 %v305_v26 }
 0x18c   : > { %v307_v32 = vpop.xlane.xlu0 %306 }
 0x18d   : > { %vm308_vm2 = vcmp.eq.f32.partialorder %v293_v22, %v307_v32  ;;  %vm309_vm3 = vcmp.eq.f32.partialorder %v294_v23, %v307_v32  ;;  %vm331_vm4 = vcmp.lt.f32.partialorder %v307_v32, %v330_v30 }
 0x18e   : > { %v310_v33 = vsel %vm308_vm2, %v296_v28, 256  ;;  %v311_v34 = vsel %vm309_vm3, %v297_v29, 256  ;;  %v337_v35 = vsel %vm331_vm4, %v307_v32, %v336_v31 }
 0x18f   : > { %338 = vst.msk [vmem:[#allocation2] sm:$0xf] %vm261_vm0, %v337_v35  ;;  %v312_v36 = vsel %vm302_vm1, %v310_v33, 2147483647  ;;  %v313_v37 = vsel %vm302_vm1, %v311_v34, 2147483647 }
 0x190   : > { %vm314_vm5 = vcmp.lt.s32.totalorder %v312_v36, %v313_v37 }
 0x191   : > { %v315_v38 = vsel %vm314_vm5, %v312_v36, %v313_v37 }
 0x192   : > { %v317_v39 = vshra.s32 %v315_v38, 16  ;;  %v316_v42 = vand.u32 65535, %v315_v38 }
 0x194   : > { %v319_v40 = vcvt.s32.f32 %v317_v39  ;;  %v318_v44 = vcvt.s32.f32 %v316_v42 }
 0x196   : > { %320 = vmin.xlane.f32.xlu1 %v319_v40 }
 0x223   : > { %v321_v43 = vpop.xlane.xlu1 %320 }
 0x224   : > { %vm322_vm6 = vcmp.eq.f32.partialorder %v319_v40, %v321_v43  ;;  %v327_v46 = vcvt.f32.s32 %v321_v43 }
 0x225   : > { %v323_v45 = vsel %vm322_vm6, %v318_v44, inf }
 0x226   : > { %324 = vmin.xlane.f32.xlu1 %v323_v45  ;;  %v328_v48 = vshll.u32 %v327_v46, 16 }
 0x2b3   : > { %v325_v47 = vpop.xlane.xlu1 %324 }
 0x2b4   : > { %v326_v49 = vcvt.f32.s32 %v325_v47 }
 0x2b6   : > { %v329_v51 = vadd.s32 %v328_v48, %v326_v49 }
 0x2b8   : > { %v333_v52 = vsel %vm331_vm4, %v329_v51, %v332_v50 }
 0x2b9   : > { %335 = vst.msk [vmem:[#allocation3] sm:$0xf] %vm261_vm0, %v333_v52 }
 0x2c0   : > { %v342_v53 = vld [vmem:[#allocation3] sm:$0xf] }
 0x2c1   : > { %343 = vst.msk [vmem:[%s254_s22] sm:$0xf] %vm261_vm0, %v342_v53 }
 0x2c2   : > { %676 = shalt.err (!%p673_p2)
}
 0x2c3   : > { %s677_s21 = scalar_lea.hbm %s997_s20, 64  ;;  %s681_s23 = scalar_lea.hbm %s1050_s3, 128 }
 0x2c4   : > { %p678_p6 = scmp.ne.s32.totalorder %s997_s20, %s677_s21  ;;  %p682_p5 = scmp.lt.u32.totalorder %s997_s20, %s1050_s3 }
 0x2c5   : > { %p683_p11 = scmp.lt.u32.totalorder %s681_s23, %s677_s21  ;;  %p685_p10 = scmp.lt.u32.totalorder %s677_s21, %s997_s20 }
 0x2c6   : > { %p679_p12 = pnand %p678_p6, %p1069_p13 }
 0x2c7   : > { %p684_p8 = por %p683_p11, %p682_p5 }
 0x2c8   : > { %p680_p9 = pneg %p679_p12 }
 0x2c9   : > { %p686_p1 = por %p685_p10, %p684_p8 }
 0x2cb   : > { %p687_p7 = pnand %p686_p1, %p680_p9 }
 0x2cd   : > { %690 = shalt.err (!%p687_p7)
}
 0x2ce   : > { %503 = dma.vmem_to_hbm [thread:$0]  (%p1069_p13), %s999_s10, 64, %s997_s20, %s345_s29  }
 0x2cf PF: > { %s370_s8 = sand.u32 1, %s733_s12   ;;  %p1070_p4 = scmp.ne.s32.totalorder %s1061_s30, 0 }
 0x2d0   : > { %p1071_p0 = scmp.ge.s32.totalorder %s753_s17, 2  ;;  %s371_s25 = scalar_lea.sflag [#allocation6], %s370_s8 }
 0x2d2   : > { %p517_p3 = pnand %p1071_p0, %p1070_p4 }
 0x2d4   : > { %728 = dma.done.wait (!%p517_p3), %s371_s25, 64  }
 0x2d5   : > { %730 = vsyncadd (!%p517_p3), %s371_s25, 4294967232  ;;  %s20_s17 = sadd.s32 1, %s753_s17   ;;  %s1072_s12 = smov %s737_s13 }
 0x2d6   : > { %p17_p2 = scmp.ge.s32.totalorder %s20_s17, 4   ;;  %s1073_s13 = smov %s741_s14 }
 0x2d7   : > { %s1074_s14 = smov %s829_s24  ;;  %s1075_s15 = smov %s749_s16 }
 0x2d8   : > { %s1076_s16 = smov %s1078_s18  ;;  %19 = sbr.rel (!%p17_p2) target bundleno = 9 (0x9), region = 100 }
 0x2df   :  { %376 = vsyncpa [#allocation5], 1 }
 0x2e0   :  { %378 = vsyncpa [#allocation5 + $0x1], 1 }
 0x2e1   :  { %379 = vsyncpa [#allocation8], 1 }
 0x2e2   :  { %380 = vsyncpa [#allocation6], 1 }
 0x2e3   :  { %382 = vsyncpa [#allocation6 + $0x1], 1 }

</bundles_post_ra>
